<compile_context>
chip_gen: v5e
topology: v5e:2x2
jax: 0.10.0
libtpu: 0.0.40
codegen_flags: <defaults>
</compile_context>

<pallas_src>
import math

import jax
import jax.numpy as jnp
from jax.experimental import pallas as pl
from jax.experimental.pallas import tpu as pltpu

# -------------------- synthetic config (small, deterministic) --------------------
SOURCE_VOCAB_SIZE = 50
PAD_IDX = 1
EMBED_DIM = 32
MAX_POSITIONS = 64
# (out_channels, kernel_width, residual) — extend_conv_spec default residual = 1
CONVOLUTIONS = ((64, 3, 1), (64, 3, 1))
SQRT_HALF = math.sqrt(0.5)


# -------------------- fused Pallas kernel --------------------
def _make_fused_encoder_kernel(layer_specs, B, T):
    """layer_specs: tuple of dicts {K, Cin, Cout, residual, has_proj} (static config)."""

    def kernel(*refs):
        it = iter(refs)
        xemb_ref = next(it)     # (R, E)   token + positional embedding (== input_embedding)
        nonpad_ref = next(it)   # (R, 1)   1.0 for non-pad tokens, 0.0 for pad
        tidx_ref = next(it)     # (R, 1)   time index of each row (int32)
        fc1_w_ref = next(it)
        fc1_b_ref = next(it)
        layer_refs = []
        for spec in layer_specs:
            proj = (next(it), next(it)) if spec["has_proj"] else None
            layer_refs.append((proj, next(it), next(it)))   # (proj, conv_w_flat, conv_b)
        fc2_w_ref = next(it)
        fc2_b_ref = next(it)
        x_out_ref = next(it)
        y_out_ref = next(it)

        xemb = xemb_ref[...]        # (R, E) f32
        nonpad = nonpad_ref[...]    # (R, 1) f32
        t_idx = tidx_ref[...]       # (R, 1) i32

        # ---- fc1 ----
        h = jnp.dot(xemb, fc1_w_ref[...], preferred_element_type=jnp.float32) + fc1_b_ref[...]

        residuals = [h]
        for spec, (proj, cw_ref, cb_ref) in zip(layer_specs, layer_refs):
            K, Cin, Cout, res = spec["K"], spec["Cin"], spec["Cout"], spec["residual"]

            if res > 0:
                residual = residuals[-res]
                if proj is not None:
                    pw_ref, pb_ref = proj
                    residual = (
                        jnp.dot(residual, pw_ref[...], preferred_element_type=jnp.float32)
                        + pb_ref[...]
                    )
            else:
                residual = None

            # masked_fill(pad, 0) — identity when there is no padding
            hm = h * nonpad
            # dropout -> identity (eval mode)

            # ---- ConvTBC as a single im2col matmul ----
            # output[t] = sum_k x[t + k - pad_l] @ w[k]   (zeros outside [0, T))
            pad_l = (K - 1) // 2
            cols = []
            for k in range(K):
                d = k - pad_l
                if d == 0:
                    s = hm
                elif d > 0:
                    # row r takes source row r + d (shift up, zero tail)
                    s = jnp.concatenate(
                        [hm[d:, :], jnp.zeros((d, Cin), jnp.float32)], axis=0
                    )
                    s = s * (t_idx + d < T).astype(jnp.float32)   # stay inside the sentence
                else:
                    dd = -d
                    s = jnp.concatenate(
                        [jnp.zeros((dd, Cin), jnp.float32), hm[:d, :]], axis=0
                    )
                    s = s * (t_idx + d >= 0).astype(jnp.float32)
                cols.append(s)
            im2col = jnp.concatenate(cols, axis=1) if K > 1 else cols[0]   # (R, K*Cin)

            z = (
                jnp.dot(im2col, cw_ref[...], preferred_element_type=jnp.float32)
                + cb_ref[...]
            )                                                              # (R, 2*Cout)

            # GLU along channels + residual combine, written as one expression (single store path)
            a = z[:, :Cout]
            g = z[:, Cout:]
            y = a * jax.nn.sigmoid(g)
            if residual is not None:
                y = (y + residual) * SQRT_HALF
            h = y
            residuals.append(h)

        # ---- fc2 + final padding mask ----
        x_fin = jnp.dot(h, fc2_w_ref[...], preferred_element_type=jnp.float32) + fc2_b_ref[...]
        x_fin = x_fin * nonpad
        # TODO(synk): GradMultiply only rescales gradients (needs num_attention_layers); forward is identity.
        y_fin = (x_fin + xemb) * SQRT_HALF

        x_out_ref[...] = x_fin.astype(x_out_ref.dtype)
        y_out_ref[...] = y_fin.astype(y_out_ref.dtype)

    return kernel


# -------------------- parameter init (deterministic, synthetic) --------------------
def init_params(key):
    keys = jax.random.split(key, 16)
    params = {}

    emb = 0.1 * jax.random.normal(keys[0], (SOURCE_VOCAB_SIZE, EMBED_DIM), jnp.float32)
    params["embed_tokens"] = emb.at[PAD_IDX].set(0.0)

    n_pos = MAX_POSITIONS + PAD_IDX + 1
    pemb = 0.1 * jax.random.normal(keys[1], (n_pos, EMBED_DIM), jnp.float32)
    params["embed_positions"] = pemb.at[PAD_IDX].set(0.0)

    in_channels = CONVOLUTIONS[0][0]
    params["fc1_w"] = jax.random.normal(keys[2], (EMBED_DIM, in_channels), jnp.float32) / math.sqrt(EMBED_DIM)
    params["fc1_b"] = jnp.zeros((in_channels,), jnp.float32)

    layer_in_channels = [in_channels]
    projections, convolutions, residuals = [], [], []
    kidx = 3
    for (out_channels, ksize, residual) in CONVOLUTIONS:
        residual_dim = out_channels if residual == 0 else layer_in_channels[-residual]
        if residual_dim != out_channels:
            pw = jax.random.normal(keys[kidx], (residual_dim, out_channels), jnp.float32) / math.sqrt(residual_dim)
            kidx += 1
            projections.append((pw, jnp.zeros((out_channels,), jnp.float32)))
        else:
            projections.append(None)
        # ConvTBC weight layout: (kernel_size, in_channels, out_channels*2)
        cw = jax.random.normal(keys[kidx], (ksize, in_channels, out_channels * 2), jnp.float32)
        cw = cw / math.sqrt(ksize * in_channels)
        kidx += 1
        convolutions.append((cw, jnp.zeros((out_channels * 2,), jnp.float32)))
        residuals.append(residual)
        in_channels = out_channels
        layer_in_channels.append(out_channels)

    params["projections"] = projections
    params["convolutions"] = convolutions
    params["residuals"] = residuals
    params["fc2_w"] = jax.random.normal(keys[kidx], (in_channels, EMBED_DIM), jnp.float32) / math.sqrt(in_channels)
    params["fc2_b"] = jnp.zeros((EMBED_DIM,), jnp.float32)
    return params


# -------------------- forward pass --------------------
def fconv_encoder_forward(params, src_tokens, src_lengths):
    del src_lengths  # lengths only affect packing in the reference; not needed here
    B, T = src_tokens.shape
    R = B * T

    # token + learned positional embeddings (fairseq make_positions semantics)
    tok_emb = jnp.take(params["embed_tokens"], src_tokens, axis=0)
    nonpad_b = src_tokens != PAD_IDX
    positions = jnp.cumsum(nonpad_b.astype(jnp.int32), axis=1) * nonpad_b.astype(jnp.int32) + PAD_IDX
    pos_emb = jnp.take(params["embed_positions"], positions, axis=0)
    x_emb = (tok_emb + pos_emb).reshape(R, EMBED_DIM).astype(jnp.float32)   # dropout -> identity (eval)

    nonpad = nonpad_b.astype(jnp.float32).reshape(R, 1)
    t_idx = jnp.tile(jnp.arange(T, dtype=jnp.int32), B).reshape(R, 1)

    # ---- pack kernel inputs (weights pre-flattened for the im2col matmul) ----
    inputs = [x_emb, nonpad, t_idx, params["fc1_w"], params["fc1_b"].reshape(1, -1)]
    layer_specs = []
    for proj, (cw, cb), res in zip(params["projections"], params["convolutions"], params["residuals"]):
        K, Cin, Cout2 = cw.shape
        layer_specs.append(
            {"K": K, "Cin": Cin, "Cout": Cout2 // 2, "residual": res, "has_proj": proj is not None}
        )
        if proj is not None:
            pw, pb = proj
            inputs += [pw, pb.reshape(1, -1)]
        inputs += [cw.reshape(K * Cin, Cout2), cb.reshape(1, -1)]
    inputs += [params["fc2_w"], params["fc2_b"].reshape(1, -1)]

    kernel = _make_fused_encoder_kernel(tuple(layer_specs), B, T)
    vmem = pl.BlockSpec(memory_space=pltpu.MemorySpace.VMEM)
    # NOTE: at this toy size everything fits VMEM on v5e/v6e/v7x, so one grid-less fused call
    # is optimal.  For large B*T, add a row-tiled grid (256-512 rows, halo of K-1 rows for the
    # conv input) marked "parallel" and size tiles for v7x's 64 MiB VMEM.
    x2d, y2d = pl.pallas_call(
        kernel,
        out_shape=(
            jax.ShapeDtypeStruct((R, EMBED_DIM), jnp.float32),
            jax.ShapeDtypeStruct((R, EMBED_DIM), jnp.float32),
        ),
        in_specs=[vmem] * len(inputs),
        out_specs=(vmem, vmem),
    )(*inputs)

    x_out = x2d.reshape(B, T, EMBED_DIM)
    y_out = y2d.reshape(B, T, EMBED_DIM)
    # TODO(synk): reference returns None when no token is padding (data-dependent); we always
    # return the mask — downstream masked_fill with an all-False mask is equivalent.
    encoder_padding_mask = src_tokens == PAD_IDX
    return {"encoder_out": (x_out, y_out), "encoder_padding_mask": encoder_padding_mask}


# -------------------- main --------------------
if __name__ == "__main__":
    key = jax.random.PRNGKey(0)
    pkey, tkey = jax.random.split(key)
    params = init_params(pkey)

    B, T = 2, 8
    src_tokens = jax.random.randint(tkey, (B, T), 2, SOURCE_VOCAB_SIZE, dtype=jnp.int32)
    # make sentence 1 shorter (length 5) -> padding tokens at the end
    src_tokens = src_tokens.at[1, 5:].set(PAD_IDX)
    src_lengths = jnp.array([8, 5], dtype=jnp.int32)

    out = fconv_encoder_forward(params, src_tokens, src_lengths)
    x_out, y_out = out["encoder_out"]
    jax.block_until_ready(x_out)
    jax.block_until_ready(y_out)
    jax.block_until_ready(out["encoder_padding_mask"])

    assert x_out.shape == (B, T, EMBED_DIM)
    assert y_out.shape == (B, T, EMBED_DIM)
    print("KERNEL_OK")
</pallas_src>

<mosaic_0001>
module attributes {stable_mosaic.version = 11 : i64} {
  func.func @kernel(%arg0: memref<16x32xf32, #tpu.memory_space<vmem>>, %arg1: memref<16x1xf32, #tpu.memory_space<vmem>>, %arg2: memref<16x1xi32, #tpu.memory_space<vmem>>, %arg3: memref<32x64xf32, #tpu.memory_space<vmem>>, %arg4: memref<1x64xf32, #tpu.memory_space<vmem>>, %arg5: memref<192x128xf32, #tpu.memory_space<vmem>>, %arg6: memref<1x128xf32, #tpu.memory_space<vmem>>, %arg7: memref<192x128xf32, #tpu.memory_space<vmem>>, %arg8: memref<1x128xf32, #tpu.memory_space<vmem>>, %arg9: memref<64x32xf32, #tpu.memory_space<vmem>>, %arg10: memref<1x32xf32, #tpu.memory_space<vmem>>, %arg11: memref<16x32xf32, #tpu.memory_space<vmem>>, %arg12: memref<16x32xf32, #tpu.memory_space<vmem>>) attributes {dimension_semantics = [], scalar_prefetch = 0 : i64, scratch_operands = 0 : i64, tpu.core_type = #tpu.core_type<tc>} {
    %c0 = arith.constant 0 : index
    %c0_0 = arith.constant 0 : index
    %0 = vector.load %arg0[%c0, %c0_0] : memref<16x32xf32, #tpu.memory_space<vmem>>, vector<16x32xf32>
    %c0_1 = arith.constant 0 : index
    %c0_2 = arith.constant 0 : index
    %1 = vector.load %arg1[%c0_1, %c0_2] : memref<16x1xf32, #tpu.memory_space<vmem>>, vector<16x1xf32>
    %c0_3 = arith.constant 0 : index
    %c0_4 = arith.constant 0 : index
    %2 = vector.load %arg2[%c0_3, %c0_4] : memref<16x1xi32, #tpu.memory_space<vmem>>, vector<16x1xi32>
    %c0_5 = arith.constant 0 : index
    %c0_6 = arith.constant 0 : index
    %3 = vector.load %arg3[%c0_5, %c0_6] : memref<32x64xf32, #tpu.memory_space<vmem>>, vector<32x64xf32>
    %cst = arith.constant dense<0.000000e+00> : vector<16x64xf32>
    %4 = tpu.matmul %0, %3, %cst {dimension_numbers = #tpu.dot_dimension_numbers<[1], [0], [0], [1], [0, 0, 1, 1], [], []>} : vector<16x32xf32>, vector<32x64xf32>, vector<16x64xf32> -> vector<16x64xf32>
    %c0_7 = arith.constant 0 : index
    %c0_8 = arith.constant 0 : index
    %5 = vector.load %arg4[%c0_7, %c0_8] : memref<1x64xf32, #tpu.memory_space<vmem>>, vector<1x64xf32>
    %6 = vector.broadcast %5 : vector<1x64xf32> to vector<16x64xf32>
    %7 = arith.addf %4, %6 : vector<16x64xf32>
    %8 = vector.broadcast %1 : vector<16x1xf32> to vector<16x64xf32>
    %9 = arith.mulf %7, %8 : vector<16x64xf32>
    %cst_9 = arith.constant 0.000000e+00 : f32
    %10 = vector.broadcast %cst_9 : f32 to vector<1x64xf32>
    %11 = vector.extract_strided_slice %9 {offsets = [0, 0], sizes = [15, 64], strides = [1, 1]} : vector<16x64xf32> to vector<15x64xf32>
    %12 = tpu.concatenate %10, %11 in 0 : vector<1x64xf32>, vector<15x64xf32> -> vector<16x64xf32>
    %c-1_i32 = arith.constant -1 : i32
    %13 = vector.broadcast %c-1_i32 : i32 to vector<16x1xi32>
    %14 = arith.addi %2, %13 : vector<16x1xi32>
    %c0_i32 = arith.constant 0 : i32
    %15 = vector.broadcast %c0_i32 : i32 to vector<16x1xi32>
    %16 = arith.cmpi sge, %14, %15 : vector<16x1xi32>
    %17 = arith.extui %16 : vector<16x1xi1> to vector<16x1xi32>
    %18 = arith.sitofp %17 : vector<16x1xi32> to vector<16x1xf32>
    %19 = vector.broadcast %18 : vector<16x1xf32> to vector<16x64xf32>
    %20 = arith.mulf %12, %19 : vector<16x64xf32>
    %21 = vector.extract_strided_slice %9 {offsets = [1, 0], sizes = [15, 64], strides = [1, 1]} : vector<16x64xf32> to vector<15x64xf32>
    %cst_10 = arith.constant 0.000000e+00 : f32
    %22 = vector.broadcast %cst_10 : f32 to vector<1x64xf32>
    %23 = tpu.concatenate %21, %22 in 0 : vector<15x64xf32>, vector<1x64xf32> -> vector<16x64xf32>
    %c1_i32 = arith.constant 1 : i32
    %24 = vector.broadcast %c1_i32 : i32 to vector<16x1xi32>
    %25 = arith.addi %2, %24 : vector<16x1xi32>
    %c8_i32 = arith.constant 8 : i32
    %26 = vector.broadcast %c8_i32 : i32 to vector<16x1xi32>
    %27 = arith.cmpi slt, %25, %26 : vector<16x1xi32>
    %28 = arith.extui %27 : vector<16x1xi1> to vector<16x1xi32>
    %29 = arith.sitofp %28 : vector<16x1xi32> to vector<16x1xf32>
    %30 = vector.broadcast %29 : vector<16x1xf32> to vector<16x64xf32>
    %31 = arith.mulf %23, %30 : vector<16x64xf32>
    %32 = tpu.concatenate %20, %9, %31 in 1 : vector<16x64xf32>, vector<16x64xf32>, vector<16x64xf32> -> vector<16x192xf32>
    %c0_11 = arith.constant 0 : index
    %c0_12 = arith.constant 0 : index
    %33 = vector.load %arg5[%c0_11, %c0_12] : memref<192x128xf32, #tpu.memory_space<vmem>>, vector<192x128xf32>
    %cst_13 = arith.constant dense<0.000000e+00> : vector<16x128xf32>
    %34 = tpu.matmul %32, %33, %cst_13 {dimension_numbers = #tpu.dot_dimension_numbers<[1], [0], [0], [1], [0, 0, 1, 1], [], []>} : vector<16x192xf32>, vector<192x128xf32>, vector<16x128xf32> -> vector<16x128xf32>
    %c0_14 = arith.constant 0 : index
    %c0_15 = arith.constant 0 : index
    %35 = vector.load %arg6[%c0_14, %c0_15] : memref<1x128xf32, #tpu.memory_space<vmem>>, vector<1x128xf32>
    %36 = vector.broadcast %35 : vector<1x128xf32> to vector<16x128xf32>
    %37 = arith.addf %34, %36 : vector<16x128xf32>
    %38 = vector.extract_strided_slice %37 {offsets = [0, 0], sizes = [16, 64], strides = [1, 1]} : vector<16x128xf32> to vector<16x64xf32>
    %39 = vector.extract_strided_slice %37 {offsets = [0, 64], sizes = [16, 64], strides = [1, 1]} : vector<16x128xf32> to vector<16x64xf32>
    %40 = arith.negf %39 : vector<16x64xf32>
    %41 = math.exp %40 : vector<16x64xf32>
    %cst_16 = arith.constant 1.000000e+00 : f32
    %42 = vector.broadcast %cst_16 : f32 to vector<16x64xf32>
    %43 = arith.addf %42, %41 : vector<16x64xf32>
    %44 = arith.divf %42, %43 : vector<16x64xf32>
    %45 = arith.mulf %38, %44 : vector<16x64xf32>
    %46 = arith.addf %45, %7 : vector<16x64xf32>
    %cst_17 = arith.constant 0.707106769 : f32
    %47 = vector.broadcast %cst_17 : f32 to vector<16x64xf32>
    %48 = arith.mulf %46, %47 : vector<16x64xf32>
    %49 = vector.broadcast %1 : vector<16x1xf32> to vector<16x64xf32>
    %50 = arith.mulf %48, %49 : vector<16x64xf32>
    %cst_18 = arith.constant 0.000000e+00 : f32
    %51 = vector.broadcast %cst_18 : f32 to vector<1x64xf32>
    %52 = vector.extract_strided_slice %50 {offsets = [0, 0], sizes = [15, 64], strides = [1, 1]} : vector<16x64xf32> to vector<15x64xf32>
    %53 = tpu.concatenate %51, %52 in 0 : vector<1x64xf32>, vector<15x64xf32> -> vector<16x64xf32>
    %c-1_i32_19 = arith.constant -1 : i32
    %54 = vector.broadcast %c-1_i32_19 : i32 to vector<16x1xi32>
    %55 = arith.addi %2, %54 : vector<16x1xi32>
    %c0_i32_20 = arith.constant 0 : i32
    %56 = vector.broadcast %c0_i32_20 : i32 to vector<16x1xi32>
    %57 = arith.cmpi sge, %55, %56 : vector<16x1xi32>
    %58 = arith.extui %57 : vector<16x1xi1> to vector<16x1xi32>
    %59 = arith.sitofp %58 : vector<16x1xi32> to vector<16x1xf32>
    %60 = vector.broadcast %59 : vector<16x1xf32> to vector<16x64xf32>
    %61 = arith.mulf %53, %60 : vector<16x64xf32>
    %62 = vector.extract_strided_slice %50 {offsets = [1, 0], sizes = [15, 64], strides = [1, 1]} : vector<16x64xf32> to vector<15x64xf32>
    %cst_21 = arith.constant 0.000000e+00 : f32
    %63 = vector.broadcast %cst_21 : f32 to vector<1x64xf32>
    %64 = tpu.concatenate %62, %63 in 0 : vector<15x64xf32>, vector<1x64xf32> -> vector<16x64xf32>
    %c1_i32_22 = arith.constant 1 : i32
    %65 = vector.broadcast %c1_i32_22 : i32 to vector<16x1xi32>
    %66 = arith.addi %2, %65 : vector<16x1xi32>
    %c8_i32_23 = arith.constant 8 : i32
    %67 = vector.broadcast %c8_i32_23 : i32 to vector<16x1xi32>
    %68 = arith.cmpi slt, %66, %67 : vector<16x1xi32>
    %69 = arith.extui %68 : vector<16x1xi1> to vector<16x1xi32>
    %70 = arith.sitofp %69 : vector<16x1xi32> to vector<16x1xf32>
    %71 = vector.broadcast %70 : vector<16x1xf32> to vector<16x64xf32>
    %72 = arith.mulf %64, %71 : vector<16x64xf32>
    %73 = tpu.concatenate %61, %50, %72 in 1 : vector<16x64xf32>, vector<16x64xf32>, vector<16x64xf32> -> vector<16x192xf32>
    %c0_24 = arith.constant 0 : index
    %c0_25 = arith.constant 0 : index
    %74 = vector.load %arg7[%c0_24, %c0_25] : memref<192x128xf32, #tpu.memory_space<vmem>>, vector<192x128xf32>
    %cst_26 = arith.constant dense<0.000000e+00> : vector<16x128xf32>
    %75 = tpu.matmul %73, %74, %cst_26 {dimension_numbers = #tpu.dot_dimension_numbers<[1], [0], [0], [1], [0, 0, 1, 1], [], []>} : vector<16x192xf32>, vector<192x128xf32>, vector<16x128xf32> -> vector<16x128xf32>
    %c0_27 = arith.constant 0 : index
    %c0_28 = arith.constant 0 : index
    %76 = vector.load %arg8[%c0_27, %c0_28] : memref<1x128xf32, #tpu.memory_space<vmem>>, vector<1x128xf32>
    %77 = vector.broadcast %76 : vector<1x128xf32> to vector<16x128xf32>
    %78 = arith.addf %75, %77 : vector<16x128xf32>
    %79 = vector.extract_strided_slice %78 {offsets = [0, 0], sizes = [16, 64], strides = [1, 1]} : vector<16x128xf32> to vector<16x64xf32>
    %80 = vector.extract_strided_slice %78 {offsets = [0, 64], sizes = [16, 64], strides = [1, 1]} : vector<16x128xf32> to vector<16x64xf32>
    %81 = arith.negf %80 : vector<16x64xf32>
    %82 = math.exp %81 : vector<16x64xf32>
    %cst_29 = arith.constant 1.000000e+00 : f32
    %83 = vector.broadcast %cst_29 : f32 to vector<16x64xf32>
    %84 = arith.addf %83, %82 : vector<16x64xf32>
    %85 = arith.divf %83, %84 : vector<16x64xf32>
    %86 = arith.mulf %79, %85 : vector<16x64xf32>
    %87 = arith.addf %86, %48 : vector<16x64xf32>
    %cst_30 = arith.constant 0.707106769 : f32
    %88 = vector.broadcast %cst_30 : f32 to vector<16x64xf32>
    %89 = arith.mulf %87, %88 : vector<16x64xf32>
    %c0_31 = arith.constant 0 : index
    %c0_32 = arith.constant 0 : index
    %90 = vector.load %arg9[%c0_31, %c0_32] : memref<64x32xf32, #tpu.memory_space<vmem>>, vector<64x32xf32>
    %cst_33 = arith.constant dense<0.000000e+00> : vector<16x32xf32>
    %91 = tpu.matmul %89, %90, %cst_33 {dimension_numbers = #tpu.dot_dimension_numbers<[1], [0], [0], [1], [0, 0, 1, 1], [], []>} : vector<16x64xf32>, vector<64x32xf32>, vector<16x32xf32> -> vector<16x32xf32>
    %c0_34 = arith.constant 0 : index
    %c0_35 = arith.constant 0 : index
    %92 = vector.load %arg10[%c0_34, %c0_35] : memref<1x32xf32, #tpu.memory_space<vmem>>, vector<1x32xf32>
    %93 = vector.broadcast %92 : vector<1x32xf32> to vector<16x32xf32>
    %94 = arith.addf %91, %93 : vector<16x32xf32>
    %95 = vector.broadcast %1 : vector<16x1xf32> to vector<16x32xf32>
    %96 = arith.mulf %94, %95 : vector<16x32xf32>
    %97 = arith.addf %96, %0 : vector<16x32xf32>
    %cst_36 = arith.constant 0.707106769 : f32
    %98 = vector.broadcast %cst_36 : f32 to vector<16x32xf32>
    %99 = arith.mulf %97, %98 : vector<16x32xf32>
    %c0_37 = arith.constant 0 : index
    %c0_38 = arith.constant 0 : index
    %100 = vector.load %arg11[%c0_37, %c0_38] : memref<16x32xf32, #tpu.memory_space<vmem>>, vector<16x32xf32>
    tpu.vector_store %arg11[%c0_37, %c0_38], %96 {strides = array<i32>} : memref<16x32xf32, #tpu.memory_space<vmem>>, vector<16x32xf32>,
    %c0_39 = arith.constant 0 : index
    %c0_40 = arith.constant 0 : index
    %101 = vector.load %arg12[%c0_39, %c0_40] : memref<16x32xf32, #tpu.memory_space<vmem>>, vector<16x32xf32>
    tpu.vector_store %arg12[%c0_39, %c0_40], %99 {strides = array<i32>} : memref<16x32xf32, #tpu.memory_space<vmem>>, vector<16x32xf32>,
    return
  }
}

</mosaic_0001>

<bundles_post_ra>
// kernel: tpu_custom_call.1
= control target key start
LH: loop header
LB: loop body
LE: loop exit
PB: predicated region body
PF: predicated region fallthrough
CT: control target
= control target key end

     0   :  { %18 = vsyncpa [#allocation3], 0  ;;  %s1000_s0 = inlined_call_operand.vmem [shape: f32[16,32], index: 0, kind: input, shape index: {}]   ;;  %s1001_s1 = inlined_call_operand.vmem [shape: f32[16,1], index: 1, kind: input, shape index: {}]   ;;  %s1002_s2 = inlined_call_operand.vmem [shape: s32[16,1], index: 2, kind: input, shape index: {}]   ;;  %s1003_s3 = inlined_call_operand.vmem [shape: f32[32,64], index: 3, kind: input, shape index: {}]   ;;  %s1004_s4 = inlined_call_operand.vmem [shape: f32[1,64], index: 4, kind: input, shape index: {}]   ;;  %s1005_s5 = inlined_call_operand.hbm [shape: f32[192,128], index: 5, kind: input, shape index: {}]   ;;  %s1006_s6 = inlined_call_operand.vmem [shape: f32[1,128], index: 6, kind: input, shape index: {}]   ;;  %s1007_s7 = inlined_call_operand.hbm [shape: f32[192,128], index: 7, kind: input, shape index: {}]   ;;  %s1008_s8 = inlined_call_operand.vmem [shape: f32[1,128], index: 8, kind: input, shape index: {}]   ;;  %s1009_s9 = inlined_call_operand.vmem [shape: f32[64,32], index: 9, kind: input, shape index: {}]   ;;  %s1010_s10 = inlined_call_operand.vmem [shape: f32[1,32], index: 10, kind: input, shape index: {}]   ;;  %s1011_s11 = inlined_call_operand.hbm [shape: f32[16,32], index: 11, kind: output, shape index: {0}]   ;;  %s1012_s12 = inlined_call_operand.hbm [shape: f32[16,32], index: 12, kind: output, shape index: {1}]  }
   0x1   :  { %19 = vsyncpa [#allocation6], 0 }
   0x2   :  { %20 = vsyncpa [#allocation4], 0 }
   0x3   :  { %21 = vsyncpa [#allocation9], 0  ;;  %s36_s23 = sshll.u32 %s1005_s5, 4  ;;  %s738_s24 = smov [#allocation2]   ;;  %s37_s23 = int_to_ptr.hbm [resolvable:$true] %s36_s23 }
   0x4   :  { %s38_s25 = sshll.u32 %s738_s24, 4  ;;  %s51_s28 = sshll.u32 %s1007_s7, 4  ;;  %s39_s25 = int_to_ptr.vmem [resolvable:$true] %s38_s25  ;;  %s52_s28 = int_to_ptr.hbm [resolvable:$true] %s51_s28 }
   0x5   :  { %s739_s29 = smov 128   ;;  %s740_s30 = smov 8  }
   0x6   :  { %44 = dma.hbm_to_vmem [thread:$0]  %s37_s23, 3072, %s39_s25, [#allocation3], %s739_s29, %s739_s29, %s740_s30  }
   0x7   :  { %s741_s13 = smov [#allocation5]  }
   0x8   :  { %s53_s14 = sshll.u32 %s741_s13, 4  ;;  %s54_s14 = int_to_ptr.vmem [resolvable:$true] %s53_s14 }
   0x9   :  { %59 = dma.hbm_to_vmem [thread:$0]  %s52_s28, 3072, %s54_s14, [#allocation6], %s739_s29, %s739_s29, %s740_s30  }
   0xa   :  { %730 = dma.done.wait [#allocation3], 3072  }
   0xb   :  { %731 = vsyncadd [#allocation3], 4294964224 }
   0xc   :  { %732 = dma.done.wait [#allocation6], 3072  }
   0xd   :  { %733 = vsyncadd [#allocation6], 4294964224  ;;  %v742_v0 = vmov 0   ;;  %v83_v1 = vld [vmem:[%s1003_s3 + $0x18] sm:$0xff]  ;;  %v82_v2 = vld [vmem:[%s1003_s3 + $0x10] sm:$0xff]  ;;  %vm88_vm0 = vcmask 261120  }
   0xe   :  { %601 = vset.pattern.permute.xlu0 %v742_v0  ;;  %602 = vset.pattern.permute.xlu1 %v742_v0  ;;  %v76_v3 = vld [vmem:[%s1001_s1] sm:$0xff]  ;;  %v81_v4 = vld [vmem:[%s1003_s3 + $0x8] sm:$0xff]  ;;  %v743_v13 = vmov 0.0   ;;  %v218_v22 = vld [vmem:[#allocation2 + $0xb8] sm:$0xff]  ;;  %s744_s5 = smov 64   ;;  %vm159_vm5 = vcmask 1046528  }
   0xf   :  { %608 = vset.pattern.permute.xlu2 %v742_v0  ;;  %107 = vmatpush.msra.mxu0 %v83_v1  ;;  %v78_v5 = vld [vmem:[%s1002_s2] sm:$0xff]  ;;  %v79_v9 = vld [vmem:[%s1002_s2 + $0x8] sm:$0xff]  ;;  %v217_v23 = vld [vmem:[#allocation2 + $0xb0] sm:$0xff]  ;;  %vm132_vm6 = vcmask 1040384   ;;  %vm192_vm7 = vcmask 523264  }
  0x10   :  { %120 = vperm.xlu0 %601, %v76_v3   ;;  %v80_v6 = vld [vmem:[%s1003_s3] sm:$0xff]  ;;  %v139_v7 = vadd.s32 4294967295, %v78_v5  ;;  %v166_v8 = vadd.s32 1, %v78_v5  ;;  %v140_v10 = vadd.s32 4294967295, %v79_v9  ;;  %v167_v11 = vadd.s32 1, %v79_v9  ;;  %v77_v16 = vld [vmem:[%s1001_s1 + $0x8] sm:$0xff]  ;;  %260 = vmatpush.msra.mxu2 %v218_v22 }
  0x11   :  { %108 = vmatpush.msra.mxu0 %v82_v2  ;;  %v848_v12 = vld [vmem:[%s1000_s0] sm:$0xff]  ;;  %v858_v21 = vld [vmem:[%s1000_s0 + $0x8] sm:$0xff]  ;;  %v214_v26 = vld [vmem:[#allocation2 + $0x98] sm:$0xff] }
  0x12   :  { %vm141_vm1 = vcmp.ge.s32.totalorder %v139_v7, 0  ;;  %vm168_vm2 = vcmp.lt.s32.totalorder %v166_v8, 8  ;;  %vm142_vm3 = vcmp.ge.s32.totalorder %v140_v10, 0  ;;  %vm169_vm4 = vcmp.lt.s32.totalorder %v167_v11, 8  ;;  %261 = vmatpush.msra.mxu2 %v217_v23  ;;  %v216_v24 = vld [vmem:[#allocation2 + $0xa8] sm:$0xff]  ;;  %v215_v25 = vld [vmem:[#allocation2 + $0xa0] sm:$0xff] }
  0x13   :  { %109 = vmatpush.msra.mxu0 %v81_v4  ;;  %v578_v14 = vsel %vm141_vm1, 1.0, %v743_v13  ;;  %v580_v15 = vsel %vm168_vm2, 1.0, %v743_v13  ;;  %v579_v18 = vsel %vm142_vm3, 1.0, %v743_v13  ;;  %v581_v19 = vsel %vm169_vm4, 1.0, %v743_v13  ;;  %v213_v27 = vld [vmem:[#allocation2 + $0x90] sm:$0xff]  ;;  %v212_v28 = vld [vmem:[#allocation2 + $0x88] sm:$0xff] }
  0x14   :  { %v603_v17 = vpack.i.bf16 %v578_v14, %v580_v15  ;;  %v609_v20 = vpack.i.bf16 %v579_v18, %v581_v19  ;;  %262 = vmatpush.msra.mxu2 %v216_v24  ;;  %v211_v29 = vld [vmem:[#allocation2 + $0x80] sm:$0xff]  ;;  %v210_v30 = vld [vmem:[#allocation2 + $0x78] sm:$0xff]  ;;  %v209_v31 = vld [vmem:[#allocation2 + $0x70] sm:$0xff] }
  0x15   :  { %110 = vmatpush.msra.mxu0 %v80_v6  ;;  %229 = vmatpush.msra.mxu1 %v210_v30  ;;  %v208_v32 = vld [vmem:[#allocation2 + $0x68] sm:$0xff]  ;;  %v614_v33 = vld [vmem:[%s1004_s4] ss:$0 sm:$0xff]  ;;  %v206_v37 = vld [vmem:[#allocation2 + $0x58] sm:$0xff]  ;;  %s544_s4 = sshll.u32 %s1011_s11, 4  ;;  %s545_s4 = int_to_ptr.hbm [resolvable:$true] %s544_s4 }
  0x16   :  { %576 = vmatmul.msk.f32.vlgmr.msra.gmra.mxu0 %vm88_vm0, %v848_v12  ;;  %604 = vperm.xlu1 %602, %v603_v17   ;;  %v207_v34 = vld [vmem:[#allocation2 + $0x60] sm:$0xff]  ;;  %v205_v39 = vld [vmem:[#allocation2 + $0x50] sm:$0xff]  ;;  %v204_v41 = vld [vmem:[#allocation2 + $0x48] sm:$0xff] }
  0x17   :  { %610 = vperm.xlu2 %608, %v609_v20   ;;  %263 = vmatpush.msra.mxu2 %v215_v25  ;;  %v203_v59 = vld [vmem:[#allocation2 + $0x40] sm:$0xff]  ;;  %v202_v60 = vld [vmem:[#allocation2 + $0x38] sm:$0xff]  ;;  %v201_v61 = vld [vmem:[#allocation2 + $0x30] sm:$0xff] }
  0x18   :  { %125 = vperm.xlu0 %601, %v77_v16   ;;  %230 = vmatpush.msra.mxu1 %v209_v31  ;;  %v200_v62 = vld [vmem:[#allocation2 + $0x28] sm:$0xff]  ;;  %v199_v63 = vld [vmem:[#allocation2 + $0x20] sm:$0xff]  ;;  %v198_v0 = vld [vmem:[#allocation2 + $0x18] sm:$0xff] }
  0x19   :  { %264 = vmatpush.msra.mxu2 %v214_v26  ;;  %v197_v1 = vld [vmem:[#allocation2 + $0x10] sm:$0xff]  ;;  %v196_v2 = vld [vmem:[#allocation2 + $0x8] sm:$0xff]  ;;  %v195_v3 = vld [vmem:[#allocation2] sm:$0xff] }
  0x1a   :  { %231 = vmatpush.msra.mxu1 %v208_v32  ;;  %v615_v14 = vld [vmem:[%s1006_s6] ss:$0 sm:$0xff] }
  0x1b   :  { %265 = vmatpush.msra.mxu2 %v213_v27 }
  0x1c   :  { %232 = vmatpush.msra.mxu1 %v207_v34 }
  0x1d   :  { %266 = vmatpush.msra.mxu2 %v212_v28 }
  0x1e   :  { %577 = vmatmul.msk.f32.gmra.mxu0 %vm88_vm0, %v858_v21  ;;  %233 = vmatpush.msra.mxu1 %v206_v37 }
  0x1f   :  { %267 = vmatpush.msra.mxu2 %v211_v29 }
  0x20   :  { %234 = vmatpush.msra.mxu1 %v205_v39 }
  0x22   :  { %235 = vmatpush.msra.mxu1 %v204_v41 }
  0x24   :  { %236 = vmatpush.msra.mxu1 %v203_v59  ;;  %v377_v59 = vld [vmem:[#allocation5 + $0xb0] sm:$0xff] }
  0x26   :  { %237 = vmatpush.msra.mxu1 %v202_v60  ;;  %v376_v60 = vld [vmem:[#allocation5 + $0xa8] sm:$0xff] }
  0x28   :  { %238 = vmatpush.msra.mxu1 %v201_v61  ;;  %v375_v61 = vld [vmem:[#allocation5 + $0xa0] sm:$0xff] }
  0x2a   :  { %239 = vmatpush.msra.mxu1 %v200_v62  ;;  %v374_v62 = vld [vmem:[#allocation5 + $0x98] sm:$0xff] }
  0x2c   :  { %240 = vmatpush.msra.mxu1 %v199_v63  ;;  %v373_v63 = vld [vmem:[#allocation5 + $0x90] sm:$0xff] }
  0x2e   :  { %241 = vmatpush.msra.mxu1 %v198_v0  ;;  %v372_v0 = vld [vmem:[#allocation5 + $0x88] sm:$0xff] }
  0x30   :  { %242 = vmatpush.msra.mxu1 %v197_v1  ;;  %v371_v1 = vld [vmem:[#allocation5 + $0x80] sm:$0xff] }
  0x32   :  { %243 = vmatpush.msra.mxu1 %v196_v2  ;;  %v370_v2 = vld [vmem:[#allocation5 + $0x78] sm:$0xff] }
  0x33   :  { %389 = vmatpush.msra.mxu3 %v370_v2 }
  0x34   :  { %244 = vmatpush.msra.mxu1 %v195_v3  ;;  %v369_v3 = vld [vmem:[#allocation5 + $0x70] sm:$0xff] }
  0x35   :  { %390 = vmatpush.msra.mxu3 %v369_v3 }
  0x71   :  { %v886_v55 = vpop.permute.xlu2 %610 }
  0x72   :  { %v612_v56 = vunpack.i.l.bf16 %v886_v55  ;;  %v613_v9 = vunpack.i.h.bf16 %v886_v55 }
  0x82   :  { %v865_v35 = vpop.permute.xlu0 %120 }
  0x88   :  { %v876_v45 = vpop.permute.xlu1 %604 }
  0x89   :  { %v606_v47 = vunpack.i.l.bf16 %v876_v45  ;;  %v607_v4 = vunpack.i.h.bf16 %v876_v45 }
  0x8a   :  { %v874_v44 = vpop.permute.xlu0 %125 }
  0x93   :  { %v112_v36 = vpop.f32.mrf.mxu0 }
  0x94   :  { %v867_v38 = vadd.f32 %v614_v33, %v112_v36 }
  0x96   :  { %v128_v40 = vmul.f32 %v865_v35, %v867_v38 }
  0x98   :  { %186 = vrot.lane.b32.xlu1 %v128_v40, %s744_s5  ;;  %v160_v48 = vrot.slane %v128_v40, 1  ;;  %v133_v49 = vrot.slane %v128_v40, 7 }
  0x9a   :  { %v138_v5 = vsel %vm132_vm6, 0.0, %v133_v49 }
  0x9b   :  { %v115_v42 = vpop.f32.mrf.mxu0  ;;  %v157_v6 = vmul.f32 %v607_v4, %v138_v5 }
  0x9c   :  { %v872_v43 = vadd.f32 %v614_v33, %v115_v42 }
  0x9e   :  { %v129_v46 = vmul.f32 %v874_v44, %v872_v43 }
  0xa0   :  { %v134_v50 = vrot.slane %v129_v46, 7  ;;  %v161_v51 = vrot.slane %v129_v46, 1  ;;  %188 = vrot.lane.b32.xlu2 %v129_v46, %s744_s5 }
  0xa2   :  { %v135_v52 = vsel %vm132_vm6, %v133_v49, %v134_v50  ;;  %v162_v53 = vsel %vm159_vm5, %v160_v48, %v161_v51  ;;  %v165_v57 = vsel %vm159_vm5, %v161_v51, 0.0 }
  0xa3   :  { %v184_v54 = vmul.f32 %v606_v47, %v162_v53  ;;  %v185_v58 = vmul.f32 %v612_v56, %v165_v57  ;;  %v158_v11 = vmul.f32 %v613_v9, %v135_v52 }
  0xa5   :  { %582 = vmatmul.msk.f32.vlgmr.msra.gmra.mxu2 %vm192_vm7, %v184_v54 }
  0xad   :  { %583 = vmatmul.msk.f32.gmra.mxu2 %vm192_vm7, %v185_v58  ;;  %v378_v58 = vld [vmem:[#allocation5 + $0xb8] sm:$0xff] }
  0xae   :  { %420 = vmatpush.msrb.mxu0 %v378_v58 }
  0xb0   :  { %421 = vmatpush.msrb.mxu0 %v377_v59 }
  0xb2   :  { %422 = vmatpush.msrb.mxu0 %v376_v60 }
  0xb4   :  { %423 = vmatpush.msrb.mxu0 %v375_v61 }
  0xb6   :  { %424 = vmatpush.msrb.mxu0 %v374_v62 }
  0xb8   :  { %425 = vmatpush.msrb.mxu0 %v373_v63 }
  0xba   :  { %426 = vmatpush.msrb.mxu0 %v372_v0 }
  0xbc   :  { %427 = vmatpush.msrb.mxu0 %v371_v1 }
  0xfa   :  { %v189_v10 = vpop.permute.xlu2 %188 }
  0xfb   :  { %v194_v13 = vsel %vm192_vm7, %v158_v11, %v189_v10  ;;  %v366_v11 = vld [vmem:[#allocation5 + $0x58] sm:$0xff] }
 0x10a   :  { %v187_v7 = vpop.permute.xlu1 %186 }
 0x10b   :  { %v193_v8 = vsel %vm192_vm7, %v157_v6, %v187_v7  ;;  %v368_v6 = vld [vmem:[#allocation5 + $0x68] sm:$0xff] }
 0x10c   :  { %245 = vmatmul.f32.vlgmr.msra.gmra.mxu1 %v193_v8  ;;  %v367_v8 = vld [vmem:[#allocation5 + $0x60] sm:$0xff]  ;;  %391 = vmatpush.msra.mxu3 %v368_v6  ;;  %v493_v6 = vld [vmem:[%s1009_s9 + $0x30] sm:$0xff] }
 0x10e   :  { %392 = vmatpush.msra.mxu3 %v367_v8 }
 0x110   :  { %393 = vmatpush.msra.mxu3 %v366_v11 }
 0x114   :  { %248 = vmatmul.f32.gmra.mxu1 %v194_v13 }
 0x128   :  { %v269_v15 = vpop.f32.mrf.mxu2 }
 0x130   :  { %v272_v23 = vpop.f32.mrf.mxu2 }
 0x189   :  { %v246_v16 = vpop.f32.mrf.mxu1 }
 0x18a   :  { %v247_v17 = vadd.f32 %v615_v14, %v246_v16 }
 0x18c   :  { %v906_v18 = vadd.f32 %v269_v15, %v247_v17  ;;  %v364_v17 = vld [vmem:[#allocation5 + $0x48] sm:$0xff] }
 0x18e   :  { %v584_v19 = vmul.f32 -1.442695, %v906_v18 }
 0x190   :  { %618 = vpow2.f32 %v584_v19 }
 0x191   :  { %v249_v20 = vpop.f32.mrf.mxu1 }
 0x192   :  { %v250_v22 = vadd.f32 %v615_v14, %v249_v20  ;;  %v365_v14 = vld [vmem:[#allocation5 + $0x50] sm:$0xff]  ;;  %v362_v20 = vld [vmem:[#allocation5 + $0x38] sm:$0xff] }
 0x193   :  { %394 = vmatpush.msra.mxu3 %v365_v14  ;;  %v491_v14 = vld [vmem:[%s1009_s9 + $0x20] sm:$0xff] }
 0x194   :  { %v909_v24 = vadd.f32 %v272_v23, %v250_v22  ;;  %v361_v23 = vld [vmem:[#allocation5 + $0x30] sm:$0xff] }
 0x195   :  { %395 = vmatpush.msra.mxu3 %v364_v17 }
 0x196   :  { %v619_v25 = vpop.eup %618  ;;  %v585_v26 = vmul.f32 -1.442695, %v909_v24 }
 0x197   :  { %v281_v27 = vadd.f32 1.0, %v619_v25 }
 0x198   :  { %620 = vpow2.f32 %v585_v26  ;;  %v360_v26 = vld [vmem:[#allocation5 + $0x28] sm:$0xff] }
 0x199   :  { %622 = vrcp.f32 %v281_v27  ;;  %v294_v33 = vand.u32 2147483648, %v281_v27  ;;  %v292_v36 = vand.u32 2147483647, %v281_v27  ;;  %vm288_vm9 = vweird.f32 %v281_v27 }
 0x19b   :  { %v295_v40 = vor.u32 1.1754944e-38, %v294_v33  ;;  %vm293_vm11 = vcmp.eq.f32.partialorder %v292_v36, 8.507059e+37  ;;  %v358_v33 = vld [vmem:[#allocation5 + $0x18] sm:$0xff]  ;;  %v356_v36 = vld [vmem:[#allocation5 + $0x8] sm:$0xff] }
 0x19e   :  { %v621_v28 = vpop.eup %620 }
 0x19f   :  { %v623_v29 = vpop.eup %622  ;;  %v282_v30 = vadd.f32 1.0, %v621_v28 }
 0x1a0   :  { %v284_v31 = vmul.f32 %v623_v29, %v281_v27  ;;  %vm289_vm8 = vweird.f32 %v623_v29 }
 0x1a1   :  { %624 = vrcp.f32 %v282_v30  ;;  %vm290_vm10 = vmor %vm288_vm9, %vm289_vm8  ;;  %v309_v49 = vand.u32 2147483648, %v282_v30  ;;  %v307_v51 = vand.u32 2147483647, %v282_v30  ;;  %vm303_vm13 = vweird.f32 %v282_v30 }
 0x1a2   :  { %v285_v32 = vsub.f32 1.0, %v284_v31 }
 0x1a3   :  { %v310_v53 = vor.u32 1.1754944e-38, %v309_v49  ;;  %vm308_vm15 = vcmp.eq.f32.partialorder %v307_v51, 8.507059e+37 }
 0x1a4   :  { %v286_v34 = vmul.f32 %v623_v29, %v285_v32 }
 0x1a6   :  { %v287_v37 = vadd.f32 %v623_v29, %v286_v34  ;;  %v357_v34 = vld [vmem:[#allocation5 + $0x10] sm:$0xff] }
 0x1a7   :  { %v625_v39 = vpop.eup %624 }
 0x1a8   :  { %v291_v41 = vsel %vm290_vm10, %v623_v29, %v287_v37  ;;  %v299_v42 = vmul.f32 %v625_v39, %v282_v30  ;;  %vm304_vm12 = vweird.f32 %v625_v39  ;;  %v359_v30 = vld [vmem:[#allocation5 + $0x20] sm:$0xff] }
 0x1a9   :  { %v296_v46 = vsel %vm293_vm11, %v295_v40, %v291_v41  ;;  %vm305_vm14 = vmor %vm303_vm13, %vm304_vm12  ;;  %v355_v40 = vld [vmem:[#allocation5] sm:$0xff] }
 0x1aa   :  { %315 = vrot.lane.b32.xlu0 %v296_v46, %s744_s5  ;;  %v300_v48 = vsub.f32 1.0, %v299_v42 }
 0x1ac   :  { %v301_v50 = vmul.f32 %v625_v39, %v300_v48 }
 0x1ae   :  { %v302_v52 = vadd.f32 %v625_v39, %v301_v50 }
 0x1b0   :  { %v306_v54 = vsel %vm305_vm14, %v625_v39, %v302_v52 }
 0x1b1   :  { %v311_v57 = vsel %vm308_vm15, %v310_v53, %v306_v54 }
 0x1b2   :  { %317 = vrot.lane.b32.xlu1 %v311_v57, %s744_s5 }
 0x21c   :  { %v316_v5 = vpop.permute.xlu0 %315 }
 0x21d   :  { %v321_v7 = vmul.f32 %v316_v5, %v906_v18  ;;  %v363_v18 = vld [vmem:[#allocation5 + $0x40] sm:$0xff]  ;;  %v494_v5 = vld [vmem:[%s1009_s9 + $0x38] sm:$0xff] }
 0x21e   :  { %396 = vmatpush.msra.mxu3 %v363_v18  ;;  %513 = vmatpush.msrb.mxu2 %v494_v5 }
 0x21f   :  { %v323_v10 = vadd.f32 %v321_v7, %v867_v38 }
 0x220   :  { %397 = vmatpush.msra.mxu3 %v362_v20  ;;  %514 = vmatpush.msrb.mxu2 %v493_v6 }
 0x221   :  { %v916_v13 = vmul.f32 0.70710677, %v323_v10  ;;  %v492_v10 = vld [vmem:[%s1009_s9 + $0x28] sm:$0xff] }
 0x222   :  { %398 = vmatpush.msra.mxu3 %v361_v23  ;;  %515 = vmatpush.msrb.mxu2 %v492_v10 }
 0x223   :  { %v327_v15 = vmul.f32 %v916_v13, %v865_v35 }
 0x224   :  { %v318_v16 = vpop.permute.xlu1 %317  ;;  %399 = vmatpush.msra.mxu3 %v360_v26  ;;  %516 = vmatpush.msrb.mxu2 %v491_v14 }
 0x225   :  { %v322_v19 = vmul.f32 %v318_v16, %v909_v24  ;;  %347 = vrot.lane.b32.xlu2 %v327_v15, %s744_s5  ;;  %v339_v27 = vrot.slane %v327_v15, 1  ;;  %v331_v29 = vrot.slane %v327_v15, 7  ;;  %v490_v15 = vld [vmem:[%s1009_s9 + $0x18] sm:$0xff] }
 0x226   :  { %400 = vmatpush.msra.mxu3 %v359_v30  ;;  %517 = vmatpush.msrb.mxu2 %v490_v15  ;;  %v488_v30 = vld [vmem:[%s1009_s9 + $0x8] sm:$0xff] }
 0x227   :  { %v324_v38 = vadd.f32 %v322_v19, %v872_v43 }
 0x228   :  { %401 = vmatpush.msra.mxu3 %v358_v33 }
 0x229   :  { %v923_v22 = vmul.f32 0.70710677, %v324_v38 }
 0x22a   :  { %402 = vmatpush.msra.mxu3 %v357_v34 }
 0x22b   :  { %v328_v25 = vmul.f32 %v923_v22, %v874_v44 }
 0x22c   :  { %403 = vmatpush.msra.mxu3 %v356_v36 }
 0x22d   :  { %349 = vrot.lane.b32.xlu0 %v328_v25, %s744_s5  ;;  %v332_v24 = vrot.slane %v328_v25, 7  ;;  %v340_v28 = vrot.slane %v328_v25, 1 }
 0x22e   :  { %404 = vmatpush.msra.mxu3 %v355_v40 }
 0x22f   :  { %v341_v43 = vsel %vm159_vm5, %v339_v27, %v340_v28  ;;  %v333_v31 = vsel %vm132_vm6, %v331_v29, %v332_v24  ;;  %v344_v37 = vsel %vm159_vm5, %v340_v28, 0.0 }
 0x230   :  { %v345_v32 = vmul.f32 %v606_v47, %v341_v43  ;;  %v346_v39 = vmul.f32 %v612_v56, %v344_v37  ;;  %v336_v47 = vsel %vm132_vm6, 0.0, %v331_v29  ;;  %v338_v48 = vmul.f32 %v613_v9, %v333_v31  ;;  %v616_v56 = vld [vmem:[%s1008_s8] ss:$0 sm:$0xff]  ;;  %v489_v29 = vld [vmem:[%s1009_s9 + $0x10] sm:$0xff]  ;;  %s557_s8 = sshll.u32 %s1012_s12, 4  ;;  %s558_s8 = int_to_ptr.hbm [resolvable:$true] %s557_s8 }
 0x231   :  { %v337_v41 = vmul.f32 %v607_v4, %v336_v47  ;;  %518 = vmatpush.msrb.mxu2 %v489_v29  ;;  %v487_v43 = vld [vmem:[%s1009_s9] sm:$0xff]  ;;  %s745_s9 = smov [#allocation7]  }
 0x232   :  { %586 = vmatmul.msk.f32.vlgmr.msrb.gmra.mxu0 %vm192_vm7, %v345_v32  ;;  %v617_v47 = vld [vmem:[%s1010_s10] ss:$0 sm:$0xff]  ;;  %s542_s0 = sshll.u32 %s745_s9, 4  ;;  %s746_s10 = smov [#allocation8]   ;;  %s543_s0 = int_to_ptr.vmem [resolvable:$true] %s542_s0 }
 0x233   :  { %519 = vmatpush.msrb.mxu2 %v488_v30  ;;  %s555_s7 = sshll.u32 %s746_s10, 4  ;;  %s556_s7 = int_to_ptr.vmem [resolvable:$true] %s555_s7 }
 0x235   :  { %520 = vmatpush.msrb.mxu2 %v487_v43 }
 0x23a   :  { %587 = vmatmul.msk.f32.gmra.mxu0 %vm192_vm7, %v346_v39 }
 0x27f   :  { %v348_v42 = vpop.permute.xlu2 %347 }
 0x280   :  { %v353_v46 = vsel %vm192_vm7, %v337_v41, %v348_v42 }
 0x281   :  { %405 = vmatmul.f32.vlgmr.msra.gmra.mxu3 %v353_v46 }
 0x29f   :  { %v350_v49 = vpop.permute.xlu0 %349 }
 0x2a0   :  { %v354_v50 = vsel %vm192_vm7, %v338_v48, %v350_v49 }
 0x2a1   :  { %408 = vmatmul.f32.gmra.mxu3 %v354_v50 }
 0x2af   :  { %v429_v53 = vpop.f32.mrf.mxu0 }
 0x2b7   :  { %v432_v7 = vpop.f32.mrf.mxu0 }
 0x304   :  { %v406_v51 = vpop.f32.mrf.mxu3 }
 0x305   :  { %v407_v52 = vadd.f32 %v616_v56, %v406_v51 }
 0x307   :  { %v430_v45 = vadd.f32 %v429_v53, %v407_v52 }
 0x309   :  { %v588_v4 = vmul.f32 -1.442695, %v430_v45 }
 0x30b   :  { %626 = vpow2.f32 %v588_v4 }
 0x311   :  { %v627_v54 = vpop.eup %626 }
 0x312   :  { %v441_v57 = vadd.f32 1.0, %v627_v54 }
 0x314   :  { %628 = vrcp.f32 %v441_v57  ;;  %v454_v59 = vand.u32 2147483648, %v441_v57  ;;  %v452_v61 = vand.u32 2147483647, %v441_v57  ;;  %vm448_vm2 = vweird.f32 %v441_v57 }
 0x316   :  { %v455_v63 = vor.u32 1.1754944e-38, %v454_v59  ;;  %vm453_vm4 = vcmp.eq.f32.partialorder %v452_v61, 8.507059e+37 }
 0x31a   :  { %v629_v58 = vpop.eup %628 }
 0x31b   :  { %v444_v55 = vmul.f32 %v629_v58, %v441_v57  ;;  %vm449_vm1 = vweird.f32 %v629_v58 }
 0x31c   :  { %vm450_vm3 = vmor %vm448_vm2, %vm449_vm1 }
 0x31d   :  { %v445_v9 = vsub.f32 1.0, %v444_v55 }
 0x31f   :  { %v446_v60 = vmul.f32 %v629_v58, %v445_v9 }
 0x321   :  { %v447_v62 = vadd.f32 %v629_v58, %v446_v60 }
 0x323   :  { %v451_v0 = vsel %vm450_vm3, %v629_v58, %v447_v62 }
 0x324   :  { %v409_v1 = vpop.f32.mrf.mxu3  ;;  %v456_v2 = vsel %vm453_vm4, %v455_v63, %v451_v0 }
 0x325   :  { %v410_v3 = vadd.f32 %v616_v56, %v409_v1  ;;  %475 = vrot.lane.b32.xlu1 %v456_v2, %s744_s5 }
 0x327   :  { %v433_v8 = vadd.f32 %v432_v7, %v410_v3 }
 0x329   :  { %v589_v11 = vmul.f32 -1.442695, %v433_v8 }
 0x32b   :  { %630 = vpow2.f32 %v589_v11 }
 0x331   :  { %v631_v16 = vpop.eup %630 }
 0x332   :  { %v442_v17 = vadd.f32 1.0, %v631_v16 }
 0x334   :  { %632 = vrcp.f32 %v442_v17  ;;  %v469_v20 = vand.u32 2147483648, %v442_v17  ;;  %v467_v25 = vand.u32 2147483647, %v442_v17  ;;  %vm463_vm6 = vweird.f32 %v442_v17 }
 0x336   :  { %v470_v27 = vor.u32 1.1754944e-38, %v469_v20  ;;  %vm468_vm9 = vcmp.eq.f32.partialorder %v467_v25, 8.507059e+37 }
 0x33a   :  { %v633_v19 = vpop.eup %632 }
 0x33b   :  { %v459_v18 = vmul.f32 %v633_v19, %v442_v17  ;;  %vm464_vm5 = vweird.f32 %v633_v19 }
 0x33c   :  { %vm465_vm8 = vmor %vm463_vm6, %vm464_vm5 }
 0x33d   :  { %v460_v38 = vsub.f32 1.0, %v459_v18 }
 0x33f   :  { %v461_v23 = vmul.f32 %v633_v19, %v460_v38 }
 0x341   :  { %v462_v26 = vadd.f32 %v633_v19, %v461_v23 }
 0x343   :  { %v466_v24 = vsel %vm465_vm8, %v633_v19, %v462_v26 }
 0x344   :  { %v471_v28 = vsel %vm468_vm9, %v470_v27, %v466_v24 }
 0x345   :  { %477 = vrot.lane.b32.xlu2 %v471_v28, %s744_s5 }
 0x397   :  { %v476_v31 = vpop.permute.xlu1 %475 }
 0x398   :  { %v481_v32 = vmul.f32 %v476_v31, %v430_v45 }
 0x39a   :  { %v483_v33 = vadd.f32 %v481_v32, %v916_v13 }
 0x39c   :  { %v485_v34 = vmul.f32 0.70710677, %v483_v33 }
 0x39e   :  { %590 = vmatmul.msk.f32.vlgmr.msrb.gmra.mxu2 %vm192_vm7, %v485_v34 }
 0x39f   :  { %v478_v36 = vpop.permute.xlu2 %477 }
 0x3a0   :  { %v482_v37 = vmul.f32 %v478_v36, %v433_v8 }
 0x3a2   :  { %v484_v39 = vadd.f32 %v482_v37, %v923_v22 }
 0x3a4   :  { %v486_v40 = vmul.f32 0.70710677, %v484_v39 }
 0x3a6   :  { %591 = vmatmul.msk.f32.gmra.mxu2 %vm192_vm7, %v486_v40 }
 0x421   :  { %v522_v41 = vpop.f32.mrf.mxu2 }
 0x422   :  { %v523_v42 = vadd.f32 %v617_v47, %v522_v41 }
 0x424   :  { %v528_v46 = vmul.f32 %v523_v42, %v865_v35 }
 0x426   :  { %v530_v13 = vadd.f32 %v528_v46, %v848_v12  ;;  %534 = vst.msk [vmem:[#allocation7] sm:$0xff] %vm88_vm0, %v528_v46 }
 0x428   :  { %v532_v48 = vmul.f32 0.70710677, %v530_v13 }
 0x429   :  { %v525_v49 = vpop.f32.mrf.mxu2 }
 0x42a   :  { %536 = vst.msk [vmem:[#allocation8] sm:$0xff] %vm88_vm0, %v532_v48  ;;  %v526_v22 = vadd.f32 %v617_v47, %v525_v49 }
 0x42c   :  { %v529_v50 = vmul.f32 %v526_v22, %v874_v44 }
 0x42e   :  { %v531_v12 = vadd.f32 %v529_v50, %v858_v21  ;;  %535 = vst.msk [vmem:[#allocation7 + $0x8] sm:$0xff] %vm88_vm0, %v529_v50 }
 0x42f   :  { %550 = dma.vmem_to_hbm [thread:$0]  %s543_s0, 256, %s545_s4, [#allocation4], %s739_s29, %s739_s29, %s740_s30  }
 0x430   :  { %v533_v35 = vmul.f32 0.70710677, %v531_v12 }
 0x432   :  { %537 = vst.msk [vmem:[#allocation8 + $0x8] sm:$0xff] %vm88_vm0, %v533_v35 }
 0x433   :  { %563 = dma.vmem_to_hbm [thread:$0]  %s556_s7, 256, %s558_s8, [#allocation9], %s739_s29, %s739_s29, %s740_s30  }
 0x434   :  { %734 = dma.done.wait [#allocation4], 256  }
 0x435   :  { %735 = vsyncadd [#allocation4], 4294967040 }
 0x436   :  { %736 = dma.done.wait [#allocation9], 256  }
 0x437   :  { %737 = vsyncadd [#allocation9], 4294967040 }
 0x438   :  { %572 = vsyncpa [#allocation3], 1 }
 0x439   :  { %573 = vsyncpa [#allocation6], 1 }
 0x43a   :  { %574 = vsyncpa [#allocation4], 1 }
 0x43b   :  { %575 = vsyncpa [#allocation9], 1 }

</bundles_post_ra>
